<compile_context>
chip_gen: v5e
topology: v5e:2x2
jax: 0.10.0
libtpu: 0.0.40
codegen_flags: <defaults>
</compile_context>

<pallas_src>
import functools

import jax
import jax.numpy as jnp
from jax.experimental import pallas as pl
from jax.experimental.pallas import tpu as pltpu


def _round_up(x: int, m: int) -> int:
    return ((x + m - 1) // m) * m


def _pick_tiles(B, in_features, out_features, tm, tn, tk):
    # tm multiple of 16 (bf16 sublane packing), tn/tk multiples of 128.
    tm = min(tm, _round_up(B, 16))
    tn = min(tn, _round_up(out_features, 128))
    tk = min(tk, _round_up(in_features, 128))

    Bp = _round_up(B, tm)
    Np = _round_up(out_features, tn)
    Kp = _round_up(in_features, tk)

    # v7x: guarantee >= 2 parallel blocks when possible so both TCs get work.
    if (Bp // tm) * (Np // tn) == 1 and tn > 128:
        tn = max(128, ((tn // 2) // 128) * 128)
        Np = _round_up(out_features, tn)

    return tm, tn, tk, Bp, Np, Kp


def _dim_increase_kernel(x_ref, w_ref, b_ref, o_ref, acc_ref):
    # x_ref: (tm, tk) bf16   activations tile
    # w_ref: (tk, tn) bf16   weight tile, already transposed to (K, N)
    # b_ref: (1, tn)  f32    bias tile
    # o_ref: (tm, tn) f32    output tile
    # acc_ref: (tm, tn) f32  VMEM accumulator (persists across the K grid axis)
    k = pl.program_id(2)

    @pl.when(k == 0)
    def _():
        acc_ref[...] = jnp.zeros_like(acc_ref)

    acc_ref[...] += jnp.dot(
        x_ref[...], w_ref[...], preferred_element_type=jnp.float32
    )

    @pl.when(k == pl.num_programs(2) - 1)
    def _():
        y = acc_ref[...] + b_ref[...]
        # LeakyReLU, PyTorch default negative_slope = 0.01
        o_ref[...] = jnp.where(y >= 0, y, 0.01 * y).astype(o_ref.dtype)


@functools.partial(jax.jit, static_argnames=("tm", "tn", "tk"))
def dim_increase_layer(x, weight, bias, *, tm=512, tn=1024, tk=1024):
    """Pallas equivalent of nn.Sequential(nn.Linear(in, out), nn.LeakyReLU()).

    x:      (B, in_features) float32
    weight: (out_features, in_features) float32   (PyTorch layout)
    bias:   (out_features,) float32
    returns (B, out_features) float32
    """
    B, in_features = x.shape
    out_features = weight.shape[0]

    tm, tn, tk, Bp, Np, Kp = _pick_tiles(B, in_features, out_features, tm, tn, tk)

    # Zero-pad (zero K-padding contributes nothing to the dot), transpose W to
    # (K, N) and cast MXU operands to bf16.  XLA fuses pad+transpose+cast into a
    # single pass over W; hoist this block for repeated-inference use.
    xp = jnp.pad(x, ((0, Bp - B), (0, Kp - in_features))).astype(jnp.bfloat16)
    wp = jnp.pad(weight, ((0, Np - out_features), (0, Kp - in_features))
                 ).T.astype(jnp.bfloat16)                     # (Kp, Np)
    bp = jnp.pad(bias, (0, Np - out_features)).astype(jnp.float32).reshape(1, Np)

    grid_m, grid_n, grid_k = Bp // tm, Np // tn, Kp // tk
    grid = (grid_m, grid_n, grid_k)

    # Double-buffered working set (+ accumulator), with a safety margin; capped
    # so it stays within v7x's 64 MiB physical VMEM.
    vmem_bytes = 2 * (tm * tk * 2 + tk * tn * 2 + tm * tn * 4 + tn * 4) + tm * tn * 4
    vmem_limit = int(min(max(vmem_bytes + (4 << 20), 16 << 20), 48 << 20))

    cost = pl.CostEstimate(
        flops=2 * Bp * Kp * Np,
        transcendentals=0,
        bytes_accessed=(
            2 * Bp * Kp * grid_n        # x (bf16), re-streamed once per N tile
            + 2 * Kp * Np * grid_m      # W (bf16), re-streamed once per M tile
            + 4 * Bp * Np               # output (f32)
            + 4 * Np                    # bias (f32)
        ),
    )

    out_padded = pl.pallas_call(
        _dim_increase_kernel,
        out_shape=jax.ShapeDtypeStruct((Bp, Np), jnp.float32),
        grid=grid,
        in_specs=[
            pl.BlockSpec((tm, tk), lambda i, j, k: (i, k)),   # x
            pl.BlockSpec((tk, tn), lambda i, j, k: (k, j)),   # W^T  (K, N)
            pl.BlockSpec((1, tn), lambda i, j, k: (0, j)),    # bias follows N tile
        ],
        out_specs=pl.BlockSpec((tm, tn), lambda i, j, k: (i, j)),
        scratch_shapes=[pltpu.VMEM((tm, tn), jnp.float32)],
        compiler_params=pltpu.CompilerParams(
            dimension_semantics=("parallel", "parallel", "arbitrary"),
            vmem_limit_bytes=vmem_limit,
        ),
        cost_estimate=cost,
    )(xp, wp, bp)

    return out_padded[:B, :out_features]


def _reference(x, weight, bias):
    y = x @ weight.T + bias
    return jnp.where(y >= 0, y, 0.01 * y)


if __name__ == "__main__":
    key = jax.random.PRNGKey(0)
    kx, kw, kb = jax.random.split(key, 3)

    # Small shapes consistent with the module (DimIncreaseLayer: in < out).
    B, in_features, out_features = 8, 32, 64
    x = jax.random.normal(kx, (B, in_features), dtype=jnp.float32)
    bound = 1.0 / (in_features ** 0.5)
    weight = jax.random.uniform(
        kw, (out_features, in_features), minval=-bound, maxval=bound, dtype=jnp.float32
    )
    bias = jax.random.uniform(
        kb, (out_features,), minval=-bound, maxval=bound, dtype=jnp.float32
    )

    out = jax.block_until_ready(dim_increase_layer(x, weight, bias))
    ref = _reference(x, weight, bias)
    assert out.shape == (B, out_features)
    # bf16 MXU operands with an f32 accumulator → relaxed tolerances vs f32 ref.
    assert jnp.allclose(out, ref, atol=2e-2, rtol=2e-2), "mismatch vs reference"

    # Multi-tile configuration (forces grid > (1,1,1); tm=16 keeps bf16 tiling).
    B2, in2, out2 = 40, 300, 700
    x2 = jax.random.normal(kx, (B2, in2), dtype=jnp.float32)
    w2 = jax.random.normal(kw, (out2, in2), dtype=jnp.float32) * 0.02
    b2 = jax.random.normal(kb, (out2,), dtype=jnp.float32) * 0.02
    out2_k = jax.block_until_ready(
        dim_increase_layer(x2, w2, b2, tm=16, tn=128, tk=128))
    assert jnp.allclose(out2_k, _reference(x2, w2, b2), atol=2e-2, rtol=2e-2)

    # Default-tile path on a larger shape (exercises the v7x N-split heuristic).
    B3, in3, out3 = 64, 256, 700
    x3 = jax.random.normal(kx, (B3, in3), dtype=jnp.float32) * 0.1
    w3 = jax.random.normal(kw, (out3, in3), dtype=jnp.float32) * 0.02
    b3 = jax.random.normal(kb, (out3,), dtype=jnp.float32) * 0.02
    out3_k = jax.block_until_ready(dim_increase_layer(x3, w3, b3))
    assert jnp.allclose(out3_k, _reference(x3, w3, b3), atol=2e-2, rtol=2e-2)

    print("KERNEL_OK")
</pallas_src>

<mosaic_0001>
module attributes {stable_mosaic.version = 11 : i64} {
  func.func @_dim_increase_kernel(%arg0: i32, %arg1: i32, %arg2: i32, %arg3: memref<16x128xbf16, #tpu.memory_space<vmem>>, %arg4: memref<128x128xbf16, #tpu.memory_space<vmem>>, %arg5: memref<1x128xf32, #tpu.memory_space<vmem>>, %arg6: memref<16x128xf32, #tpu.memory_space<vmem>>, %arg7: memref<16x128xf32, #tpu.memory_space<vmem>>) attributes {dimension_semantics = [#tpu.dimension_semantics<parallel>, #tpu.dimension_semantics<parallel>, #tpu.dimension_semantics<arbitrary>], iteration_bounds = array<i64: 1, 1, 1>, scalar_prefetch = 0 : i64, scratch_operands = 1 : i64, tpu.core_type = #tpu.core_type<tc>, window_params = [{transform_indices = @transform_0, window_bounds = array<i64: 16, 128>}, {transform_indices = @transform_1, window_bounds = array<i64: 128, 128>}, {transform_indices = @transform_2, window_bounds = array<i64: 1, 128>}, {transform_indices = @transform_3, window_bounds = array<i64: 16, 128>}]} {
    %c0_i32 = arith.constant 0 : i32
    %0 = arith.cmpi eq, %arg2, %c0_i32 : i32
    %1 = arith.extui %0 : i1 to i32
    %c0_i32_0 = arith.constant 0 : i32
    %2 = arith.cmpi ne, %1, %c0_i32_0 : i32
    scf.if %2 {
      %cst_10 = arith.constant 0.000000e+00 : f32
      %12 = vector.broadcast %cst_10 : f32 to vector<16x128xf32>
      %c0_11 = arith.constant 0 : index
      %c0_12 = arith.constant 0 : index
      %13 = vector.load %arg7[%c0_11, %c0_12] : memref<16x128xf32, #tpu.memory_space<vmem>>, vector<16x128xf32>
      tpu.vector_store %arg7[%c0_11, %c0_12], %12 {strides = array<i32>} : memref<16x128xf32, #tpu.memory_space<vmem>>, vector<16x128xf32>,
    } else {
    }
    %c0 = arith.constant 0 : index
    %c0_1 = arith.constant 0 : index
    %3 = vector.load %arg7[%c0, %c0_1] : memref<16x128xf32, #tpu.memory_space<vmem>>, vector<16x128xf32>
    %c0_2 = arith.constant 0 : index
    %c0_3 = arith.constant 0 : index
    %4 = vector.load %arg3[%c0_2, %c0_3] : memref<16x128xbf16, #tpu.memory_space<vmem>>, vector<16x128xbf16>
    %c0_4 = arith.constant 0 : index
    %c0_5 = arith.constant 0 : index
    %5 = vector.load %arg4[%c0_4, %c0_5] : memref<128x128xbf16, #tpu.memory_space<vmem>>, vector<128x128xbf16>
    %cst = arith.constant dense<0.000000e+00> : vector<16x128xf32>
    %6 = tpu.matmul %4, %5, %cst {dimension_numbers = #tpu.dot_dimension_numbers<[1], [0], [0], [1], [0, 0, 1, 1], [], []>} : vector<16x128xbf16>, vector<128x128xbf16>, vector<16x128xf32> -> vector<16x128xf32>
    %7 = arith.addf %3, %6 : vector<16x128xf32>
    %c0_6 = arith.constant 0 : index
    %c0_7 = arith.constant 0 : index
    %8 = vector.load %arg7[%c0_6, %c0_7] : memref<16x128xf32, #tpu.memory_space<vmem>>, vector<16x128xf32>
    tpu.vector_store %arg7[%c0_6, %c0_7], %7 {strides = array<i32>} : memref<16x128xf32, #tpu.memory_space<vmem>>, vector<16x128xf32>,
    %c0_i32_8 = arith.constant 0 : i32
    %9 = arith.cmpi eq, %arg2, %c0_i32_8 : i32
    %10 = arith.extui %9 : i1 to i32
    %c0_i32_9 = arith.constant 0 : i32
    %11 = arith.cmpi ne, %10, %c0_i32_9 : i32
    scf.if %11 {
      %c0_10 = arith.constant 0 : index
      %c0_11 = arith.constant 0 : index
      %12 = vector.load %arg7[%c0_10, %c0_11] : memref<16x128xf32, #tpu.memory_space<vmem>>, vector<16x128xf32>
      %c0_12 = arith.constant 0 : index
      %c0_13 = arith.constant 0 : index
      %13 = vector.load %arg5[%c0_12, %c0_13] : memref<1x128xf32, #tpu.memory_space<vmem>>, vector<1x128xf32>
      %14 = vector.broadcast %13 : vector<1x128xf32> to vector<16x128xf32>
      %15 = arith.addf %12, %14 : vector<16x128xf32>
      %cst_14 = arith.constant 0.000000e+00 : f32
      %16 = vector.broadcast %cst_14 : f32 to vector<16x128xf32>
      %17 = arith.cmpf oge, %15, %16 : vector<16x128xf32>
      %cst_15 = arith.constant 0.00999999977 : f32
      %18 = vector.broadcast %cst_15 : f32 to vector<16x128xf32>
      %19 = arith.mulf %18, %15 : vector<16x128xf32>
      %20 = arith.select %17, %15, %19 : vector<16x128xi1>, vector<16x128xf32>
      %c0_16 = arith.constant 0 : index
      %c0_17 = arith.constant 0 : index
      %21 = vector.load %arg6[%c0_16, %c0_17] : memref<16x128xf32, #tpu.memory_space<vmem>>, vector<16x128xf32>
      tpu.vector_store %arg6[%c0_16, %c0_17], %20 {strides = array<i32>} : memref<16x128xf32, #tpu.memory_space<vmem>>, vector<16x128xf32>,
    } else {
    }
    return
  }
  func.func @transform_0(%arg0: i32, %arg1: i32, %arg2: i32) -> (i32, i32) {
    %c0_i32 = arith.constant 0 : i32
    return %arg0, %arg2 : i32, i32
  }
  func.func @transform_1(%arg0: i32, %arg1: i32, %arg2: i32) -> (i32, i32) {
    %c0_i32 = arith.constant 0 : i32
    return %arg2, %arg1 : i32, i32
  }
  func.func @transform_2(%arg0: i32, %arg1: i32, %arg2: i32) -> (i32, i32) {
    %c0_i32 = arith.constant 0 : i32
    %c0_i32_0 = arith.constant 0 : i32
    return %c0_i32, %arg1 : i32, i32
  }
  func.func @transform_3(%arg0: i32, %arg1: i32, %arg2: i32) -> (i32, i32) {
    %c0_i32 = arith.constant 0 : i32
    return %arg0, %arg1 : i32, i32
  }
}

</mosaic_0001>

<bundles_post_ra>
// kernel: dim_increase_layer.1
= control target key start
LH: loop header
LB: loop body
LE: loop exit
PB: predicated region body
PF: predicated region fallthrough
CT: control target
= control target key end

     0   :  { %s237_s1 = inlined_call_operand.vmem [shape: bf16[128,128], index: 1, kind: input, shape index: {}]   ;;  %s238_s2 = inlined_call_operand.vmem [shape: f32[1,128], index: 2, kind: input, shape index: {}]   ;;  %s239_s0 = inlined_call_operand.vmem [shape: bf16[16,128], index: 0, kind: input, shape index: {}]   ;;  %s240_s3 = inlined_call_operand.vmem [shape: f32[16,128], index: 3, kind: output, shape index: {}]  }
   0x1   :  { %v179_v0 = vld [vmem:[%s237_s1 + $0x38] sm:$0xff]  ;;  %v178_v1 = vld [vmem:[%s237_s1 + $0x30] sm:$0xff]  ;;  %v177_v2 = vld [vmem:[%s237_s1 + $0x28] sm:$0xff] }
   0x2   :  { %94 = vmatpush.bf16.msra.mxu0 %v179_v0  ;;  %v176_v3 = vld [vmem:[%s237_s1 + $0x20] sm:$0xff]  ;;  %v175_v4 = vld [vmem:[%s237_s1 + $0x18] sm:$0xff]  ;;  %v174_v5 = vld [vmem:[%s237_s1 + $0x10] sm:$0xff] }
   0x3   :  { %v173_v6 = vld [vmem:[%s237_s1 + $0x8] sm:$0xff]  ;;  %v172_v7 = vld [vmem:[%s237_s1] sm:$0xff] }
   0x4   :  { %v171_v8 = vld [vmem:[%s239_s0] sm:$0xff] }
   0x5   :  { %v180_v9 = vld [vmem:[%s238_s2] ss:$0 sm:$0xff] }
   0x6   :  { %95 = vmatpush.bf16.msra.mxu0 %v178_v1 }
   0xa   :  { %96 = vmatpush.bf16.msra.mxu0 %v177_v2 }
   0xe   :  { %97 = vmatpush.bf16.msra.mxu0 %v176_v3 }
  0x12   :  { %98 = vmatpush.bf16.msra.mxu0 %v175_v4 }
  0x16   :  { %99 = vmatpush.bf16.msra.mxu0 %v174_v5 }
  0x1a   :  { %100 = vmatpush.bf16.msra.mxu0 %v173_v6 }
  0x1e   :  { %101 = vmatpush.bf16.msra.mxu0 %v172_v7 }
  0x21   :  { %102 = vmatmul.bf16.vlgmr.msra.gmra.mxu0 %v171_v8 }
  0x9e   :  { %v103_v10 = vpop.f32.mrf.mxu0 }
  0x9f   :  { %v121_v11 = vadd.f32 %v180_v9, %v103_v10 }
  0xa1   :  { %vm123_vm0 = vcmp.ge.f32.partialorder %v121_v11, 0.0  ;;  %v125_v12 = vmul.f32 0.01, %v121_v11 }
  0xa3   :  { %v127_v13 = vsel %vm123_vm0, %v121_v11, %v125_v12 }
  0xa4   :  { %129 = vst [vmem:[%s240_s3] sm:$0xff] %v127_v13 }
  0xa6   :  { %v105_v14 = vpop.f32.mrf.mxu0 }
  0xa7   :  { %v122_v15 = vadd.f32 %v180_v9, %v105_v14 }
  0xa9   :  { %vm124_vm1 = vcmp.ge.f32.partialorder %v122_v15, 0.0  ;;  %v126_v16 = vmul.f32 0.01, %v122_v15 }
  0xab   :  { %v128_v17 = vsel %vm124_vm1, %v122_v15, %v126_v16 }
  0xac   :  { %130 = vst [vmem:[%s240_s3 + $0x8] sm:$0xff] %v128_v17 }

</bundles_post_ra>
